<compile_context>
chip_gen: v7x
topology: tpu7x:2x2x1
jax: 0.10.0
libtpu: 0.0.40
codegen_flags: <defaults>
</compile_context>

<pallas_src>
import numpy as np

import jax
import jax.numpy as jnp
from jax import lax
from jax.experimental import pallas as pl
from jax.experimental.pallas import tpu as pltpu


# --------------------------------------------------------------------------- #
# Kernels
# --------------------------------------------------------------------------- #
def _copy_kernel(src_ref, out_ref):
    """Streaming copy of one lane-dense row tile (identity gather for arange)."""
    out_ref[...] = src_ref[...]


def _onehot_gather_kernel(idx_ref, table_ref, out_ref):
    """Vectorized row gather for one tile of output rows.

    idx_ref   : VMEM (TM, 1) int32            indices for this tile
    table_ref : VMEM (n_vocab, embed_dim)     embedding table (small vocab)
    out_ref   : VMEM (TM, embed_dim)

    out[r, :] = table[idx[r], :]  via one-hot @ table on the MXU.
    OOB indices yield an all-zero one-hot row (no unchecked VMEM reads).
    """
    tm = out_ref.shape[0]
    n_vocab = table_ref.shape[0]
    vocab_ids = lax.broadcasted_iota(jnp.int32, (tm, n_vocab), 1)
    onehot = (vocab_ids == idx_ref[...]).astype(table_ref.dtype)   # (TM, n_vocab)
    out_ref[...] = jnp.dot(
        onehot, table_ref[...], preferred_element_type=jnp.float32
    ).astype(out_ref.dtype)


# --------------------------------------------------------------------------- #
# Helpers
# --------------------------------------------------------------------------- #
def _pick_row_tile(rows: int, max_tile: int = 512) -> int:
    """Largest row tile <= max_tile that divides `rows` and respects the
    (8, 128) sublane constraint (multiple of 8, or the full extent)."""
    if rows <= max_tile:
        return rows
    t = (max_tile // 8) * 8
    while t >= 8:
        if rows % t == 0:
            return t
        t -= 8
    return rows  # fall back to a single full-extent block


def _is_identity_arange(indices) -> bool:
    """True iff `indices` is a concrete arange(n) buffer (the LPE case)."""
    try:
        arr = np.asarray(indices)
    except Exception:   # traced value -> use the general gather path
        return False
    flat = arr.reshape(-1)
    return bool(np.array_equal(flat, np.arange(flat.shape[0], dtype=flat.dtype)))


# --------------------------------------------------------------------------- #
# Forward paths
# --------------------------------------------------------------------------- #
def _lpe_copy_forward(table: jax.Array, n_nodes: int) -> jax.Array:
    """arange indices => out = table[:n_nodes]; lane-dense tiled streaming copy."""
    n_vocab, embed_dim = table.shape

    # Lane-dense packing: if embed_dim < 128 (or not a multiple of 128), view
    # rows as contiguous 128-lane slabs so every store is a full vreg.
    if embed_dim % 128 != 0 and (n_nodes * embed_dim) % 128 == 0 \
            and (n_vocab * embed_dim) % 128 == 0:
        src = table.reshape(-1, 128)             # free row-major reinterpretation
        rows, cols = (n_nodes * embed_dim) // 128, 128
        packed = True
    else:
        src = table
        rows, cols = n_nodes, embed_dim
        packed = False

    tm = _pick_row_tile(rows)
    grid = (rows // tm,)

    out = pl.pallas_call(
        _copy_kernel,
        out_shape=jax.ShapeDtypeStruct((rows, cols), table.dtype),
        grid=grid,
        # Only the first `rows` blocks of the (packed) table are ever addressed,
        # so HBM traffic is exactly n_nodes * embed_dim in + out.
        in_specs=[pl.BlockSpec((tm, cols), lambda i: (i, 0))],
        out_specs=pl.BlockSpec((tm, cols), lambda i: (i, 0)),
        compiler_params=pltpu.CompilerParams(
            dimension_semantics=("parallel",),   # v7x: shard row tiles across TCs
        ),
    )(src)

    if packed:
        out = out.reshape(n_nodes, embed_dim)
    return out


def _lpe_gather_forward(indices: jax.Array, table: jax.Array) -> jax.Array:
    """General (non-arange) indices: vectorized one-hot MXU gather per row tile."""
    n_vocab, embed_dim = table.shape
    n_nodes = indices.shape[-1]
    idx_col = indices.reshape(n_nodes, 1).astype(jnp.int32)

    tm = _pick_row_tile(n_nodes, max_tile=256)
    grid = (n_nodes // tm,)

    # NOTE: the table stays VMEM-resident (same block every step, fetched once);
    # this one-hot path is intended for the small-vocab LPE case.  For large
    # vocab tables, switch to a DMA-side row gather (pl.Element row BlockSpec
    # driven by scalar-prefetched indices) with the table in HBM.
    return pl.pallas_call(
        _onehot_gather_kernel,
        out_shape=jax.ShapeDtypeStruct((n_nodes, embed_dim), table.dtype),
        grid=grid,
        in_specs=[
            pl.BlockSpec((tm, 1), lambda i: (i, 0)),                 # indices tile
            pl.BlockSpec((n_vocab, embed_dim), lambda i: (0, 0)),    # table (resident)
        ],
        out_specs=pl.BlockSpec((tm, embed_dim), lambda i: (i, 0)),
        compiler_params=pltpu.CompilerParams(
            dimension_semantics=("parallel",),
        ),
    )(idx_col, table)


def lpe_forward(indices: jax.Array, table: jax.Array) -> jax.Array:
    """indices: (1, n_nodes) int32; table: (n_vocab, embed_dim) float32.
    Returns (1, n_nodes, embed_dim), matching nn.Embedding(pos)."""
    _, n_nodes = indices.shape

    if _is_identity_arange(indices):
        out_2d = _lpe_copy_forward(table, n_nodes)       # LPE fast path
    else:
        out_2d = _lpe_gather_forward(indices, table)     # general gather

    return out_2d[None, :, :]


# --------------------------------------------------------------------------- #
# Demo / self-test
# --------------------------------------------------------------------------- #
if __name__ == "__main__":
    n_nodes, embed_dim = 16, 32

    # Deterministic stand-in for the nn.Embedding weight (~ N(0, 1)).
    key = jax.random.PRNGKey(0)
    table = jax.random.normal(key, (n_nodes, embed_dim), dtype=jnp.float32)

    # self.pos = arange(n_nodes).unsqueeze(0), non-trainable buffer.
    pos = jnp.arange(n_nodes, dtype=jnp.int32)[None, :]    # (1, n_nodes)

    # Module forward (fast identity-slice path).
    out = jax.block_until_ready(lpe_forward(pos, table))
    ref = jnp.take(table, pos[0], axis=0)[None, :, :]
    assert out.shape == (1, n_nodes, embed_dim), out.shape
    assert jnp.allclose(out, ref), "mismatch vs reference gather (arange path)"

    # Also exercise the general gather path with permuted indices.
    perm = jax.random.permutation(jax.random.PRNGKey(1), n_nodes).astype(jnp.int32)[None, :]
    out_g = jax.block_until_ready(lpe_forward(perm, table))
    ref_g = jnp.take(table, perm[0], axis=0)[None, :, :]
    assert jnp.allclose(out_g, ref_g), "mismatch vs reference gather (general path)"

    print("KERNEL_OK")
</pallas_src>

<mosaic_0001>
module attributes {stable_mosaic.version = 11 : i64} {
  func.func @_copy_kernel(%arg0: i32, %arg1: memref<4x128xf32, #tpu.memory_space<vmem>>, %arg2: memref<4x128xf32, #tpu.memory_space<vmem>>) attributes {dimension_semantics = [#tpu.dimension_semantics<parallel>], iteration_bounds = array<i64: 1>, scalar_prefetch = 0 : i64, scratch_operands = 0 : i64, tpu.core_type = #tpu.core_type<tc>, window_params = [{transform_indices = @transform_0, window_bounds = array<i64: 4, 128>}, {transform_indices = @transform_1, window_bounds = array<i64: 4, 128>}]} {
    %c0 = arith.constant 0 : index
    %c0_0 = arith.constant 0 : index
    %0 = vector.load %arg1[%c0, %c0_0] : memref<4x128xf32, #tpu.memory_space<vmem>>, vector<4x128xf32>
    %c0_1 = arith.constant 0 : index
    %c0_2 = arith.constant 0 : index
    %1 = vector.load %arg2[%c0_1, %c0_2] : memref<4x128xf32, #tpu.memory_space<vmem>>, vector<4x128xf32>
    tpu.vector_store %arg2[%c0_1, %c0_2], %0 {strides = array<i32>} : memref<4x128xf32, #tpu.memory_space<vmem>>, vector<4x128xf32>,
    return
  }
  func.func @transform_0(%arg0: i32) -> (i32, i32) {
    %c0_i32 = arith.constant 0 : i32
    %c0_i32_0 = arith.constant 0 : i32
    return %arg0, %c0_i32 : i32, i32
  }
  func.func @transform_1(%arg0: i32) -> (i32, i32) {
    %c0_i32 = arith.constant 0 : i32
    %c0_i32_0 = arith.constant 0 : i32
    return %arg0, %c0_i32 : i32, i32
  }
}

</mosaic_0001>

<bundles_post_ra>
// kernel: tpu_custom_call.1
= control target key start
LH: loop header
LB: loop body
LE: loop exit
PB: predicated region body
PF: predicated region fallthrough
CT: control target
= control target key end

     0   :  { %6 = vsyncpa [#allocation3], 0  ;;  %s124_s0 = inlined_call_operand.hbm [shape: f32[4,128], index: 0, kind: input, shape index: {}]   ;;  %s125_s1 = inlined_call_operand.hbm [shape: f32[4,128], index: 1, kind: output, shape index: {}]  }
   0x1   :  { %7 = vsyncpa [#allocation4], 0  ;;  %s88_s6 = smov [#allocation2]   ;;  %s40_s10 = scalar_lea.hbm %s124_s0, 64 }
   0x2   :  { %s14_s7 = sshll.u32 %s88_s6, 4  ;;  %p41_p0 = scmp.ne.s32.totalorder %s124_s0, %s40_s10  ;;  %s15_s7 = int_to_ptr.vmem [resolvable:$true] %s14_s7 }
   0x3   :  { %p44_p1 = scmp.lt.u32.totalorder %s40_s10, %s124_s0 }
   0x5   :  { %p46_p2 = pnand %p44_p1, %p41_p0 }
   0x7   :  { %49 = shalt.err (!%p46_p2)
}
   0x8   :  { %s50_s15 = scalar_lea.vmem %s15_s7, 64  ;;  %p55_p4 = scmp.lt.s32.totalorder %s15_s7, %s15_s7 }
   0x9   :  { %p51_p3 = scmp.ne.s32.totalorder %s15_s7, %s50_s15  ;;  %p56_p5 = scmp.lt.s32.totalorder %s50_s15, %s50_s15 }
   0xb   :  { %p57_p6 = por %p56_p5, %p55_p4 }
   0xd   :  { %p58_p7 = pnand %p57_p6, %p51_p3 }
   0xf   :  { %61 = shalt.err (!%p58_p7)
}
  0x10   :  { %17 = dma.hbm_to_vmem [thread:$0]  %s124_s0, 64, %s15_s7, [#allocation3]  }
  0x11   :  { %84 = dma.done.wait [#allocation3], 64  }
  0x12   :  { %85 = vsyncadd [#allocation3], 4294967232  ;;  %s89_s18 = smov [#allocation5]   ;;  %v21_v0 = vld [vmem:[#allocation2] sm:$0xf] }
  0x13   :  { %s29_s19 = sshll.u32 %s89_s18, 4  ;;  %22 = vst [vmem:[#allocation5] sm:$0xf] %v21_v0  ;;  %s30_s19 = int_to_ptr.vmem [resolvable:$true] %s29_s19 }
  0x14   :  { %s62_s20 = scalar_lea.vmem %s30_s19, 64  ;;  %p67_p9 = scmp.lt.s32.totalorder %s30_s19, %s30_s19 }
  0x15   :  { %p63_p8 = scmp.ne.s32.totalorder %s30_s19, %s62_s20  ;;  %p68_p10 = scmp.lt.s32.totalorder %s62_s20, %s62_s20 }
  0x17   :  { %p69_p11 = por %p68_p10, %p67_p9 }
  0x19   :  { %p70_p12 = pnand %p69_p11, %p63_p8 }
  0x1b   :  { %73 = shalt.err (!%p70_p12)
}
  0x1c   :  { %s74_s23 = scalar_lea.hbm %s125_s1, 64 }
  0x1d   :  { %p75_p13 = scmp.ne.s32.totalorder %s125_s1, %s74_s23  ;;  %p78_p0 = scmp.lt.u32.totalorder %s74_s23, %s125_s1 }
  0x1f   :  { %p80_p1 = pnand %p78_p0, %p75_p13 }
  0x21   :  { %83 = shalt.err (!%p80_p1)
}
  0x22   :  { %32 = dma.vmem_to_hbm [thread:$0]  %s30_s19, 64, %s125_s1, [#allocation4]  }
  0x23   :  { %86 = dma.done.wait [#allocation4], 64  }
  0x24   :  { %87 = vsyncadd [#allocation4], 4294967232 }
  0x25   :  { %36 = vsyncpa [#allocation3], 1 }
  0x26   :  { %37 = vsyncpa [#allocation4], 1 }

</bundles_post_ra>
